<compile_context>
chip_gen: v5e
topology: v5e:2x2
jax: 0.10.0
libtpu: 0.0.40
codegen_flags: <defaults>
</compile_context>

<pallas_src>
import jax
import jax.numpy as jnp
from jax.experimental import pallas as pl
from jax.experimental.pallas import tpu as pltpu


OUT_PAD = 8             # 3-wide output padded to 8 lanes in HBM (narrow writeback)
TB_CAP = 4096           # batch-tile cap: ~8 MiB double-buffered VMEM, fits all gens
PALLAS_MIN_BATCH = 256  # below this, pallas_call overhead dominates -> plain XLA


def affine_kernel(x_ref, w_ref, b_ref, o_ref):
    # One MXU pass per batch tile: (TB, 54) @ (54, 8) + (1, 8), f32 accumulate.
    o_ref[...] = (
        jnp.dot(x_ref[...], w_ref[...], preferred_element_type=jnp.float32)
        + b_ref[...]
    ).astype(o_ref.dtype)


def _round_up(x, m):
    return ((x + m - 1) // m) * m


def _fold_params(params):
    """Collapse the 5 bias-affine layers into one (54, 3) weight + (1, 3) bias.

    Exact for this module since forward() never applies a nonlinearity (only
    float summation-order differences, well inside 1e-4 tolerance).
    """
    w_eff, b_eff = params[0]
    b_eff = b_eff.reshape(1, -1)
    for (w, b) in params[1:]:
        b_eff = b_eff @ w + b.reshape(1, -1)
        w_eff = w_eff @ w
    return w_eff, b_eff


def _pallas_affine(x, w_pad, b_pad):
    """x: (B, 54) f32, w_pad: (54, OUT_PAD), b_pad: (1, OUT_PAD) -> (B, OUT_PAD)."""
    B, F = x.shape

    # >= 2 grid steps (v7x: both TensorCores get work), capped so double-buffered
    # x/out tiles stay well inside every generation's default scoped VMEM.
    TB = max(8, min(TB_CAP, _round_up(pl.cdiv(B, 2), 8)))
    grid = (pl.cdiv(B, TB),)

    flops = 2 * B * F * OUT_PAD
    bytes_accessed = x.size * 4 + w_pad.size * 4 + b_pad.size * 4 + B * OUT_PAD * 4

    return pl.pallas_call(
        affine_kernel,
        out_shape=jax.ShapeDtypeStruct((B, OUT_PAD), jnp.float32),
        grid=grid,
        in_specs=[
            # x batch tile, software-pipelined; ragged final block is padded on
            # load and its out-of-bounds rows are dropped on store by Pallas.
            pl.BlockSpec((TB, F), lambda i: (i, 0)),
            pl.BlockSpec((F, OUT_PAD), lambda i: (0, 0)),   # folded weight, VMEM-resident
            pl.BlockSpec((1, OUT_PAD), lambda i: (0, 0)),   # folded bias, VMEM-resident
        ],
        out_specs=pl.BlockSpec((TB, OUT_PAD), lambda i: (i, 0)),
        compiler_params=pltpu.CompilerParams(
            dimension_semantics=("parallel",),  # v7x: shard batch over 2 TCs
        ),
        cost_estimate=pl.CostEstimate(
            flops=flops, transcendentals=0, bytes_accessed=bytes_accessed
        ),
    )(x, w_pad, b_pad)


def net_emb_forward(x, params, *, min_pallas_batch=PALLAS_MIN_BATCH):
    """x: (B, 54) float32. params: list of (W (in,out), b (out,)) for 5 layers."""
    B, F = x.shape
    w_eff, b_eff = _fold_params(params)
    out_dim = w_eff.shape[1]

    if B < min_pallas_batch:
        # Tiny batch: a fused XLA dot is strictly faster than any kernel launch.
        return x @ w_eff + b_eff

    # Pad only the effective output dim 3 -> 8 with zero columns (exact).
    w_pad = jnp.zeros((F, OUT_PAD), jnp.float32).at[:, :out_dim].set(w_eff)
    b_pad = jnp.zeros((1, OUT_PAD), jnp.float32).at[:, :out_dim].set(b_eff)

    out = _pallas_affine(x, w_pad, b_pad)
    return out[:, :out_dim]


def init_params(key):
    """Deterministic init matching the PyTorch module's layer shapes.
    Weights stored as (in, out) so the math is x @ W + b (equivalent to
    torch's x @ W^T + b with W of shape (out, in))."""
    dims = [54, 64, 128, 64, 32, 3]
    params = []
    for i in range(len(dims) - 1):
        fan_in, fan_out = dims[i], dims[i + 1]
        key, kw, kb = jax.random.split(key, 3)
        bound = 1.0 / jnp.sqrt(fan_in)
        w = jax.random.uniform(kw, (fan_in, fan_out), jnp.float32, -bound, bound)
        b = jax.random.uniform(kb, (fan_out,), jnp.float32, -bound, bound)
        params.append((w, b))
    return params


def reference_forward(x, params):
    # Matches the PyTorch module's forward: 5 affine layers, no activation.
    h = x
    for (w, b) in params:
        h = h @ w + b
    return h


if __name__ == "__main__":
    key = jax.random.PRNGKey(0)
    key, kx_small, kx_big = jax.random.split(key, 3)

    # TODO(synk): sklearn StandardScaler preprocessing happens outside the
    # module; inputs here are already-standardized synthetic features.
    params = init_params(key)

    # Tiny batch goes through the fused-XLA fast path of the dispatcher.
    x_small = jax.random.normal(kx_small, (8, 54), dtype=jnp.float32)
    out_small = jax.block_until_ready(net_emb_forward(x_small, params))
    ref_small = reference_forward(x_small, params)
    assert out_small.shape == (8, 3)
    assert jnp.allclose(out_small, ref_small, atol=1e-4, rtol=1e-4)

    # Non-multiple-of-8 batch exercises the Pallas kernel, including the
    # ragged (masked) final batch tile and the 2-step grid.
    B = 333
    x = jax.random.normal(kx_big, (B, 54), dtype=jnp.float32)
    out = net_emb_forward(x, params)          # B >= PALLAS_MIN_BATCH -> Pallas path
    out = jax.block_until_ready(out)
    ref = reference_forward(x, params)
    assert out.shape == (B, 3)
    assert jnp.allclose(out, ref, atol=1e-4, rtol=1e-4), "mismatch vs pure-JAX reference"

    print("KERNEL_OK")
</pallas_src>

<mosaic_0001>
module attributes {stable_mosaic.version = 11 : i64} {
  func.func @affine_kernel(%arg0: i32, %arg1: memref<168x54xf32, #tpu.memory_space<vmem>>, %arg2: memref<54x8xf32, #tpu.memory_space<vmem>>, %arg3: memref<1x8xf32, #tpu.memory_space<vmem>>, %arg4: memref<168x8xf32, #tpu.memory_space<vmem>>) attributes {dimension_semantics = [#tpu.dimension_semantics<parallel>], iteration_bounds = array<i64: 2>, scalar_prefetch = 0 : i64, scratch_operands = 0 : i64, tpu.core_type = #tpu.core_type<tc>, window_params = [{transform_indices = @transform_0, window_bounds = array<i64: 168, 54>}, {pipeline_mode = #tpu.pipeline_mode<synchronous>, transform_indices = @transform_1, window_bounds = array<i64: 54, 8>}, {pipeline_mode = #tpu.pipeline_mode<synchronous>, transform_indices = @transform_2, window_bounds = array<i64: 1, 8>}, {transform_indices = @transform_3, window_bounds = array<i64: 168, 8>}]} {
    %c0 = arith.constant 0 : index
    %c0_0 = arith.constant 0 : index
    %0 = vector.load %arg1[%c0, %c0_0] : memref<168x54xf32, #tpu.memory_space<vmem>>, vector<168x54xf32>
    %c0_1 = arith.constant 0 : index
    %c0_2 = arith.constant 0 : index
    %1 = vector.load %arg2[%c0_1, %c0_2] : memref<54x8xf32, #tpu.memory_space<vmem>>, vector<54x8xf32>
    %cst = arith.constant dense<0.000000e+00> : vector<168x8xf32>
    %2 = tpu.matmul %0, %1, %cst {dimension_numbers = #tpu.dot_dimension_numbers<[1], [0], [0], [1], [0, 0, 1, 1], [], []>} : vector<168x54xf32>, vector<54x8xf32>, vector<168x8xf32> -> vector<168x8xf32>
    %c0_3 = arith.constant 0 : index
    %c0_4 = arith.constant 0 : index
    %3 = vector.load %arg3[%c0_3, %c0_4] : memref<1x8xf32, #tpu.memory_space<vmem>>, vector<1x8xf32>
    %4 = vector.broadcast %3 : vector<1x8xf32> to vector<168x8xf32>
    %5 = arith.addf %2, %4 : vector<168x8xf32>
    %c0_5 = arith.constant 0 : index
    %c0_6 = arith.constant 0 : index
    %6 = vector.load %arg4[%c0_5, %c0_6] : memref<168x8xf32, #tpu.memory_space<vmem>>, vector<168x8xf32>
    tpu.vector_store %arg4[%c0_5, %c0_6], %5 {strides = array<i32>} : memref<168x8xf32, #tpu.memory_space<vmem>>, vector<168x8xf32>,
    return
  }
  func.func @transform_0(%arg0: i32) -> (i32, i32) {
    %c0_i32 = arith.constant 0 : i32
    %c0_i32_0 = arith.constant 0 : i32
    return %arg0, %c0_i32 : i32, i32
  }
  func.func @transform_1(%arg0: i32) -> (i32, i32) {
    %c0_i32 = arith.constant 0 : i32
    %c0_i32_0 = arith.constant 0 : i32
    %c0_i32_1 = arith.constant 0 : i32
    return %c0_i32, %c0_i32_0 : i32, i32
  }
  func.func @transform_2(%arg0: i32) -> (i32, i32) {
    %c0_i32 = arith.constant 0 : i32
    %c0_i32_0 = arith.constant 0 : i32
    %c0_i32_1 = arith.constant 0 : i32
    return %c0_i32, %c0_i32_0 : i32, i32
  }
  func.func @transform_3(%arg0: i32) -> (i32, i32) {
    %c0_i32 = arith.constant 0 : i32
    %c0_i32_0 = arith.constant 0 : i32
    return %arg0, %c0_i32 : i32, i32
  }
}

</mosaic_0001>

<bundles_post_ra>
// kernel: tpu_custom_call.1
= control target key start
LH: loop header
LB: loop body
LE: loop exit
PB: predicated region body
PF: predicated region fallthrough
CT: control target
= control target key end

     0   :  { %s521_s12 = smov 0   ;;  %s680_s0 = inlined_call_operand.vmem [shape: f32[333,54], index: 0, kind: input, shape index: {}]   ;;  %s681_s1 = inlined_call_operand.vmem [shape: f32[54,8], index: 1, kind: input, shape index: {}]   ;;  %s682_s2 = inlined_call_operand.vmem [shape: f32[1,8], index: 2, kind: input, shape index: {}]   ;;  %s683_s3 = inlined_call_operand.vmem [shape: f32[333,8], index: 3, kind: output, shape index: {}]  }
   0x1 LB: > { %s432_s13 = sadd.s32 4294967295, %s499_s12   ;;  %p436_p0 = scmp.ge.s32.totalorder %s499_s12, 1  ;;  %s499_s12 = sphi %s521_s12, %s13_s12  }
   0x2   : > { %p138_p1 = scmp.lt.s32.totalorder %s499_s12, 3 }
   0x4   : > { %p139_p2 = pnand %p436_p0, %p138_p1 }
   0x5   : > { %s162_s18 = smul.u32 (!%p139_p2), 21, %s432_s13 }
   0x6   : > { %142 = sbr.rel (%p139_p2) target bundleno = 200 (0xc8), region = 32 }
   0x7   : > { %p163_p3 = scmp.lt.s32.totalorder (!%p139_p2), %s162_s18, 41 }
   0xb   : > { %v201_v0 = vld [vmem:[%s681_s1 + $0x30] sm:$0x3f]  ;;  %vm270_vm0 = vcmask 1045504   ;;  %v200_v1 = vld [vmem:[%s681_s1 + $0x28] sm:$0xff]  ;;  %v199_v2 = vld [vmem:[%s681_s1 + $0x20] sm:$0xff]  ;;  %s685_s18 = smov (!%p163_p3, %s162_s18), 41 }
   0xc   : > { %464 = vmatpush.msk.msra.mxu2 %vm270_vm0, %v201_v0  ;;  %465 = vmatpush.msk.msra.mxu3 %vm270_vm0, %v201_v0  ;;  %v198_v3 = vld [vmem:[%s681_s1 + $0x18] sm:$0xff]  ;;  %v197_v4 = vld [vmem:[%s681_s1 + $0x10] sm:$0xff]  ;;  %s437_s25 = sshll.u32 %s685_s18, 3  ;;  %v196_v5 = vld [vmem:[%s681_s1 + $0x8] sm:$0xff]  ;;  %vm206_vm1 = vcmask 441344   ;;  %vm354_vm2 = vcmask 64512  }
   0xd   : > { %439 = vmatpush.msk.msra.mxu0 %vm270_vm0, %v201_v0  ;;  %463 = vmatpush.msk.msra.mxu1 %vm270_vm0, %v201_v0  ;;  %s555_s30 = scalar_lea.vmem %s680_s0, %s437_s25  ;;  %v195_v6 = vld [vmem:[%s681_s1] sm:$0xff]  ;;  %s614_s10 = scalar_lea.vmem %s683_s3, %s437_s25 }
   0xe   : > { %467 = vmatpush.msra.mxu2 %v200_v1  ;;  %468 = vmatpush.msra.mxu3 %v200_v1  ;;  %v184_v7 = vld [vmem:[%s555_s30 + $0x50] sm:$0xff]  ;;  %v190_v8 = vld [vmem:[%s555_s30 + $0x80] sm:$0xff]  ;;  %v179_v10 = vld [vmem:[%s555_s30 + $0x28] sm:$0xff] }
   0xf   : > { %284 = vmatpush.msra.mxu0 %v200_v1  ;;  %466 = vmatpush.msra.mxu1 %v200_v1  ;;  %v174_v9 = vld [vmem:[%s555_s30] sm:$0xff]  ;;  %v185_v11 = vld [vmem:[%s555_s30 + $0x58] sm:$0xff]  ;;  %v191_v12 = vld [vmem:[%s555_s30 + $0x88] sm:$0xff] }
  0x10   : > { %470 = vmatpush.msra.mxu2 %v199_v2  ;;  %471 = vmatpush.msra.mxu3 %v199_v2  ;;  %v175_v13 = vld [vmem:[%s555_s30 + $0x8] sm:$0xff]  ;;  %v180_v14 = vld [vmem:[%s555_s30 + $0x30] sm:$0xff]  ;;  %v186_v15 = vld [vmem:[%s555_s30 + $0x60] sm:$0xff] }
  0x11   : > { %285 = vmatpush.msra.mxu0 %v199_v2  ;;  %469 = vmatpush.msra.mxu1 %v199_v2  ;;  %v192_v16 = vld [vmem:[%s555_s30 + $0x90] sm:$0xff]  ;;  %v181_v18 = vld [vmem:[%s555_s30 + $0x38] sm:$0xff]  ;;  %v187_v19 = vld [vmem:[%s555_s30 + $0x68] sm:$0xff] }
  0x12   : > { %473 = vmatpush.msra.mxu2 %v198_v3  ;;  %474 = vmatpush.msra.mxu3 %v198_v3  ;;  %v176_v17 = vld [vmem:[%s555_s30 + $0x10] sm:$0xff]  ;;  %v193_v20 = vld [vmem:[%s555_s30 + $0x98] sm:$0xff]  ;;  %v182_v22 = vld [vmem:[%s555_s30 + $0x40] sm:$0xff] }
  0x13   : > { %286 = vmatpush.msra.mxu0 %v198_v3  ;;  %472 = vmatpush.msra.mxu1 %v198_v3  ;;  %v177_v21 = vld [vmem:[%s555_s30 + $0x18] sm:$0xff]  ;;  %v188_v23 = vld [vmem:[%s555_s30 + $0x70] sm:$0xff]  ;;  %v194_v24 = vld [vmem:[%s555_s30 + $0xa0] sm:$0xff] }
  0x14   : > { %476 = vmatpush.msra.mxu2 %v197_v4  ;;  %477 = vmatpush.msra.mxu3 %v197_v4  ;;  %v178_v25 = vld [vmem:[%s555_s30 + $0x20] sm:$0xff]  ;;  %v183_v26 = vld [vmem:[%s555_s30 + $0x48] sm:$0xff]  ;;  %v189_v27 = vld [vmem:[%s555_s30 + $0x78] sm:$0xff] }
  0x15   : > { %287 = vmatpush.msra.mxu0 %v197_v4  ;;  %475 = vmatpush.msra.mxu1 %v197_v4  ;;  %v605_v28 = vld [vmem:[%s682_s2] ss:$0 sm:$0xff] }
  0x16   : > { %479 = vmatpush.msra.mxu2 %v196_v5  ;;  %480 = vmatpush.msra.mxu3 %v196_v5 }
  0x17   : > { %288 = vmatpush.msra.mxu0 %v196_v5  ;;  %478 = vmatpush.msra.mxu1 %v196_v5 }
  0x18   : > { %482 = vmatpush.msra.mxu2 %v195_v6  ;;  %483 = vmatpush.msra.mxu3 %v195_v6 }
  0x19   : > { %450 = vmatmul.msk.f32.vlgmr.msra.gmra.mxu2 %vm206_vm1, %v184_v7  ;;  %456 = vmatmul.msk.f32.vlgmr.msra.gmra.mxu3 %vm206_vm1, %v190_v8 }
  0x1a   : > { %289 = vmatpush.msra.mxu0 %v195_v6  ;;  %481 = vmatpush.msra.mxu1 %v195_v6 }
  0x1b   : > { %440 = vmatmul.msk.f32.vlgmr.msra.gmra.mxu0 %vm206_vm1, %v174_v9  ;;  %445 = vmatmul.msk.f32.vlgmr.msra.gmra.mxu1 %vm206_vm1, %v179_v10 }
  0x21   : > { %451 = vmatmul.msk.f32.gmra.mxu2 %vm206_vm1, %v185_v11  ;;  %457 = vmatmul.msk.f32.gmra.mxu3 %vm206_vm1, %v191_v12 }
  0x23   : > { %441 = vmatmul.msk.f32.gmra.mxu0 %vm206_vm1, %v175_v13  ;;  %446 = vmatmul.msk.f32.gmra.mxu1 %vm206_vm1, %v180_v14 }
  0x29   : > { %452 = vmatmul.msk.f32.gmra.mxu2 %vm206_vm1, %v186_v15  ;;  %458 = vmatmul.msk.f32.gmra.mxu3 %vm206_vm1, %v192_v16 }
  0x2b   : > { %442 = vmatmul.msk.f32.gmra.mxu0 %vm206_vm1, %v176_v17  ;;  %447 = vmatmul.msk.f32.gmra.mxu1 %vm206_vm1, %v181_v18 }
  0x31   : > { %453 = vmatmul.msk.f32.gmra.mxu2 %vm206_vm1, %v187_v19  ;;  %459 = vmatmul.msk.f32.gmra.mxu3 %vm206_vm1, %v193_v20 }
  0x33   : > { %443 = vmatmul.msk.f32.gmra.mxu0 %vm206_vm1, %v177_v21  ;;  %448 = vmatmul.msk.f32.gmra.mxu1 %vm206_vm1, %v182_v22 }
  0x39   : > { %454 = vmatmul.msk.f32.gmra.mxu2 %vm206_vm1, %v188_v23  ;;  %460 = vmatmul.msk.f32.gmra.mxu3 %vm206_vm1, %v194_v24 }
  0x3b   : > { %444 = vmatmul.msk.f32.gmra.mxu0 %vm206_vm1, %v178_v25  ;;  %449 = vmatmul.msk.f32.gmra.mxu1 %vm206_vm1, %v183_v26 }
  0x41   : > { %455 = vmatmul.msk.f32.gmra.mxu2 %vm206_vm1, %v189_v27 }
  0x98   : > { %v291_v29 = vpop.f32.mrf.mxu0  ;;  %v306_v30 = vpop.f32.mrf.mxu1 }
  0x99   : > { %v292_v31 = vadd.f32 %v605_v28, %v291_v29  ;;  %v307_v32 = vadd.f32 %v605_v28, %v306_v30 }
  0x9b   : > { %355 = vst.msk [vmem:[%s614_s10] sm:$0xff] %vm354_vm2, %v292_v31 }
  0x9c   : > { %v321_v33 = vpop.f32.mrf.mxu2  ;;  %360 = vst.msk [vmem:[%s614_s10 + $0x28] sm:$0xff] %vm354_vm2, %v307_v32  ;;  %v339_v34 = vpop.f32.mrf.mxu3 }
  0x9d   : > { %v322_v35 = vadd.f32 %v605_v28, %v321_v33  ;;  %v340_v36 = vadd.f32 %v605_v28, %v339_v34 }
  0x9f   : > { %365 = vst.msk [vmem:[%s614_s10 + $0x50] sm:$0xff] %vm354_vm2, %v322_v35 }
  0xa0   : > { %371 = vst.msk [vmem:[%s614_s10 + $0x80] sm:$0xff] %vm354_vm2, %v340_v36  ;;  %v294_v37 = vpop.f32.mrf.mxu0  ;;  %v309_v38 = vpop.f32.mrf.mxu1 }
  0xa1   : > { %v295_v39 = vadd.f32 %v605_v28, %v294_v37  ;;  %v310_v40 = vadd.f32 %v605_v28, %v309_v38 }
  0xa3   : > { %356 = vst.msk [vmem:[%s614_s10 + $0x8] sm:$0xff] %vm354_vm2, %v295_v39 }
  0xa4   : > { %v324_v41 = vpop.f32.mrf.mxu2  ;;  %361 = vst.msk [vmem:[%s614_s10 + $0x30] sm:$0xff] %vm354_vm2, %v310_v40  ;;  %v342_v42 = vpop.f32.mrf.mxu3 }
  0xa5   : > { %v325_v43 = vadd.f32 %v605_v28, %v324_v41  ;;  %v343_v44 = vadd.f32 %v605_v28, %v342_v42 }
  0xa7   : > { %366 = vst.msk [vmem:[%s614_s10 + $0x58] sm:$0xff] %vm354_vm2, %v325_v43 }
  0xa8   : > { %372 = vst.msk [vmem:[%s614_s10 + $0x88] sm:$0xff] %vm354_vm2, %v343_v44  ;;  %v297_v45 = vpop.f32.mrf.mxu0  ;;  %v312_v46 = vpop.f32.mrf.mxu1 }
  0xa9   : > { %v298_v47 = vadd.f32 %v605_v28, %v297_v45  ;;  %v313_v48 = vadd.f32 %v605_v28, %v312_v46 }
  0xab   : > { %357 = vst.msk [vmem:[%s614_s10 + $0x10] sm:$0xff] %vm354_vm2, %v298_v47 }
  0xac   : > { %v327_v49 = vpop.f32.mrf.mxu2  ;;  %362 = vst.msk [vmem:[%s614_s10 + $0x38] sm:$0xff] %vm354_vm2, %v313_v48  ;;  %v345_v50 = vpop.f32.mrf.mxu3 }
  0xad   : > { %v328_v51 = vadd.f32 %v605_v28, %v327_v49  ;;  %v346_v52 = vadd.f32 %v605_v28, %v345_v50 }
  0xaf   : > { %367 = vst.msk [vmem:[%s614_s10 + $0x60] sm:$0xff] %vm354_vm2, %v328_v51 }
  0xb0   : > { %373 = vst.msk [vmem:[%s614_s10 + $0x90] sm:$0xff] %vm354_vm2, %v346_v52  ;;  %v300_v53 = vpop.f32.mrf.mxu0  ;;  %v315_v54 = vpop.f32.mrf.mxu1 }
  0xb1   : > { %v301_v55 = vadd.f32 %v605_v28, %v300_v53  ;;  %v316_v56 = vadd.f32 %v605_v28, %v315_v54 }
  0xb3   : > { %358 = vst.msk [vmem:[%s614_s10 + $0x18] sm:$0xff] %vm354_vm2, %v301_v55 }
  0xb4   : > { %v330_v57 = vpop.f32.mrf.mxu2  ;;  %363 = vst.msk [vmem:[%s614_s10 + $0x40] sm:$0xff] %vm354_vm2, %v316_v56  ;;  %v348_v58 = vpop.f32.mrf.mxu3 }
  0xb5   : > { %v331_v59 = vadd.f32 %v605_v28, %v330_v57  ;;  %v349_v60 = vadd.f32 %v605_v28, %v348_v58 }
  0xb7   : > { %368 = vst.msk [vmem:[%s614_s10 + $0x68] sm:$0xff] %vm354_vm2, %v331_v59 }
  0xb8   : > { %374 = vst.msk [vmem:[%s614_s10 + $0x98] sm:$0xff] %vm354_vm2, %v349_v60  ;;  %v303_v61 = vpop.f32.mrf.mxu0  ;;  %v318_v62 = vpop.f32.mrf.mxu1 }
  0xb9   : > { %v304_v63 = vadd.f32 %v605_v28, %v303_v61  ;;  %v319_v0 = vadd.f32 %v605_v28, %v318_v62 }
  0xbb   : > { %359 = vst.msk [vmem:[%s614_s10 + $0x20] sm:$0xff] %vm354_vm2, %v304_v63 }
  0xbc   : > { %v333_v1 = vpop.f32.mrf.mxu2  ;;  %364 = vst.msk [vmem:[%s614_s10 + $0x48] sm:$0xff] %vm354_vm2, %v319_v0  ;;  %v351_v2 = vpop.f32.mrf.mxu3 }
  0xbd   : > { %v334_v3 = vadd.f32 %v605_v28, %v333_v1  ;;  %v352_v4 = vadd.f32 %v605_v28, %v351_v2 }
  0xbf   : > { %369 = vst.msk [vmem:[%s614_s10 + $0x70] sm:$0xff] %vm354_vm2, %v334_v3 }
  0xc0   : > { %375 = vst.msk [vmem:[%s614_s10 + $0xa0] sm:$0xff] %vm354_vm2, %v352_v4 }
  0xc4   : > { %v336_v5 = vpop.f32.mrf.mxu2 }
  0xc5   : > { %v337_v6 = vadd.f32 %v605_v28, %v336_v5 }
  0xc7   : > { %370 = vst.msk [vmem:[%s614_s10 + $0x78] sm:$0xff] %vm354_vm2, %v337_v6 }
  0xc8 PF: > { %s13_s12 = sadd.s32 1, %s499_s12  }
  0xc9   : > { %p10_p4 = scmp.ge.s32.totalorder %s13_s12, 4  }
  0xcb   :  { %12 = sbr.rel (!%p10_p4) target bundleno = 1 (0x1), region = 62 }

</bundles_post_ra>
